<compile_context>
chip_gen: v7x
topology: tpu7x:2x2x1
jax: 0.10.0
libtpu: 0.0.40
codegen_flags: <defaults>
</compile_context>

<pallas_src>
import math
import functools

import jax
import jax.numpy as jnp
from jax import lax
from jax.experimental import pallas as pl
from jax.experimental.pallas import tpu as pltpu


def mlp_kernel(x_ref, w1_ref, b1_ref, w2_ref, b2_ref, o_ref):
    # fc1: (tm, Cin) @ (Cin, H) -> (tm, H), f32 accumulation on the MXU.
    h = jnp.dot(x_ref[...], w1_ref[...], preferred_element_type=jnp.float32)
    h = h + b1_ref[...]  # (1, H) broadcasts over rows, f32
    # Exact GELU (PyTorch nn.GELU default): 0.5*x*(1+erf(x/sqrt(2))), in f32.
    h = 0.5 * h * (1.0 + lax.erf(h * (1.0 / math.sqrt(2.0))))
    # TODO(synk): dropout (p=0.0) is an identity at default/eval; no RNG path here.
    # fc2: cast activation to the weight dtype (bf16 fast path) for the MXU.
    h = h.astype(w2_ref.dtype)
    y = jnp.dot(h, w2_ref[...], preferred_element_type=jnp.float32)
    y = y + b2_ref[...]
    o_ref[...] = y.astype(o_ref.dtype)


def _round_up(x, m):
    return ((x + m - 1) // m) * m


@functools.partial(jax.jit, static_argnames=("tm", "use_bf16"))
def mlp_pallas(x, w1, b1, w2, b2, *, tm=256, use_bf16=True):
    """x: (B, N, Cin). w1: (Cin, H), b1: (H,), w2: (H, Cout), b2: (Cout,).

    Returns (B, N, Cout) in x.dtype.
    """
    B, N, Cin = x.shape
    H = w1.shape[1]
    Cout = w2.shape[1]
    M = B * N

    out_dtype = x.dtype
    mm_dtype = jnp.bfloat16 if use_bf16 else jnp.float32

    x2 = x.reshape(M, Cin).astype(mm_dtype)
    w1m = w1.astype(mm_dtype)
    w2m = w2.astype(mm_dtype)
    b1_2d = b1.reshape(1, H).astype(jnp.float32)
    b2_2d = b2.reshape(1, Cout).astype(jnp.float32)

    # Big row tile for MXU density; clamp for small problems (multiple of 8).
    tm_eff = min(tm, _round_up(M, 8))
    # Pad rows so every grid step sees a full tile; slice back afterwards.
    M_pad = _round_up(M, tm_eff)
    if M_pad != M:
        x2 = jnp.pad(x2, ((0, M_pad - M), (0, 0)))
    grid = (M_pad // tm_eff,)

    mm_bytes = jnp.dtype(mm_dtype).itemsize
    cost = pl.CostEstimate(
        flops=2 * M * (Cin * H + H * Cout),
        transcendentals=M * H,
        bytes_accessed=(M * Cin + Cin * H + H * Cout) * mm_bytes
        + (H + Cout) * 4
        + M * Cout * jnp.dtype(out_dtype).itemsize,
    )

    out = pl.pallas_call(
        mlp_kernel,
        out_shape=jax.ShapeDtypeStruct((M_pad, Cout), out_dtype),
        grid_spec=pltpu.PrefetchScalarGridSpec(
            num_scalar_prefetch=0,
            grid=grid,
            in_specs=[
                pl.BlockSpec((tm_eff, Cin), lambda i: (i, 0)),  # x tile (streams)
                pl.BlockSpec((Cin, H), lambda i: (0, 0)),       # W1 (resident)
                pl.BlockSpec((1, H), lambda i: (0, 0)),         # b1 (resident)
                pl.BlockSpec((H, Cout), lambda i: (0, 0)),      # W2 (resident)
                pl.BlockSpec((1, Cout), lambda i: (0, 0)),      # b2 (resident)
            ],
            out_specs=pl.BlockSpec((tm_eff, Cout), lambda i: (i, 0)),
        ),
        compiler_params=pltpu.CompilerParams(
            dimension_semantics=("parallel",),
            vmem_limit_bytes=64 * 1024 * 1024,  # above 32 MiB scoped default
        ),
        cost_estimate=cost,
    )(x2, w1m, b1_2d, w2m, b2_2d)

    if M_pad != M:
        out = out[:M]
    return out.reshape(B, N, Cout)


def mlp_reference(x, w1, b1, w2, b2):
    h = x @ w1 + b1
    h = 0.5 * h * (1.0 + lax.erf(h / jnp.sqrt(2.0)))
    return h @ w2 + b2


if __name__ == "__main__":
    # Small ViT-like shapes: batch=2, seq=8 tokens, in=32, hidden=64, out=32
    B, N = 2, 8
    in_features, hidden_features, out_features = 32, 64, 32

    key = jax.random.PRNGKey(0)
    kx, kw1, kb1, kw2, kb2 = jax.random.split(key, 5)

    x = jax.random.normal(kx, (B, N, in_features), dtype=jnp.float32)

    # Deterministic param init (Linear-like fan-in scaling), stored pre-transposed.
    w1 = jax.random.normal(kw1, (in_features, hidden_features), jnp.float32) / math.sqrt(in_features)
    b1 = jax.random.normal(kb1, (hidden_features,), jnp.float32) * 0.01
    w2 = jax.random.normal(kw2, (hidden_features, out_features), jnp.float32) / math.sqrt(hidden_features)
    b2 = jax.random.normal(kb2, (out_features,), jnp.float32) * 0.01

    y_ref = mlp_reference(x, w1, b1, w2, b2)

    # 1) Exact-arithmetic path (f32 matmuls) -> tight tolerance vs reference.
    y_f32 = jax.block_until_ready(mlp_pallas(x, w1, b1, w2, b2, use_bf16=False))
    assert y_f32.shape == (B, N, out_features)
    assert jnp.allclose(y_f32, y_ref, atol=1e-5, rtol=1e-5), "f32 mismatch vs reference"

    # 2) Fast path (bf16 matmul operands, f32 accumulation) -> looser tolerance.
    y_bf16 = jax.block_until_ready(mlp_pallas(x, w1, b1, w2, b2, use_bf16=True))
    assert y_bf16.shape == (B, N, out_features)
    assert jnp.allclose(y_bf16, y_ref, atol=5e-2, rtol=5e-2), "bf16 mismatch vs reference"

    # 3) Multi-step grid with a non-multiple row count (exercises tm=256 tiling + padding).
    kx2 = jax.random.fold_in(kx, 1)
    x_big = jax.random.normal(kx2, (2, 520, in_features), dtype=jnp.float32)  # M=1040
    y_big = jax.block_until_ready(mlp_pallas(x_big, w1, b1, w2, b2, use_bf16=True))
    y_big_ref = mlp_reference(x_big, w1, b1, w2, b2)
    assert y_big.shape == (2, 520, out_features)
    assert jnp.allclose(y_big, y_big_ref, atol=5e-2, rtol=5e-2), "tiled bf16 mismatch"

    print("KERNEL_OK")
</pallas_src>

<mosaic_0001>
module attributes {stable_mosaic.version = 11 : i64} {
  func.func @mlp_kernel(%arg0: i32, %arg1: memref<16x32xf32, #tpu.memory_space<vmem>>, %arg2: memref<32x64xf32, #tpu.memory_space<vmem>>, %arg3: memref<1x64xf32, #tpu.memory_space<vmem>>, %arg4: memref<64x32xf32, #tpu.memory_space<vmem>>, %arg5: memref<1x32xf32, #tpu.memory_space<vmem>>, %arg6: memref<16x32xf32, #tpu.memory_space<vmem>>) attributes {dimension_semantics = [#tpu.dimension_semantics<parallel>], iteration_bounds = array<i64: 1>, scalar_prefetch = 0 : i64, scratch_operands = 0 : i64, tpu.core_type = #tpu.core_type<tc>, window_params = [{transform_indices = @transform_0, window_bounds = array<i64: 16, 32>}, {pipeline_mode = #tpu.pipeline_mode<synchronous>, transform_indices = @transform_1, window_bounds = array<i64: 32, 64>}, {pipeline_mode = #tpu.pipeline_mode<synchronous>, transform_indices = @transform_2, window_bounds = array<i64: 1, 64>}, {pipeline_mode = #tpu.pipeline_mode<synchronous>, transform_indices = @transform_3, window_bounds = array<i64: 64, 32>}, {pipeline_mode = #tpu.pipeline_mode<synchronous>, transform_indices = @transform_4, window_bounds = array<i64: 1, 32>}, {transform_indices = @transform_5, window_bounds = array<i64: 16, 32>}]} {
    %c0 = arith.constant 0 : index
    %c0_0 = arith.constant 0 : index
    %0 = vector.load %arg1[%c0, %c0_0] : memref<16x32xf32, #tpu.memory_space<vmem>>, vector<16x32xf32>
    %c0_1 = arith.constant 0 : index
    %c0_2 = arith.constant 0 : index
    %1 = vector.load %arg2[%c0_1, %c0_2] : memref<32x64xf32, #tpu.memory_space<vmem>>, vector<32x64xf32>
    %cst = arith.constant dense<0.000000e+00> : vector<16x64xf32>
    %2 = tpu.matmul %0, %1, %cst {dimension_numbers = #tpu.dot_dimension_numbers<[1], [0], [0], [1], [0, 0, 1, 1], [], []>} : vector<16x32xf32>, vector<32x64xf32>, vector<16x64xf32> -> vector<16x64xf32>
    %c0_3 = arith.constant 0 : index
    %c0_4 = arith.constant 0 : index
    %3 = vector.load %arg3[%c0_3, %c0_4] : memref<1x64xf32, #tpu.memory_space<vmem>>, vector<1x64xf32>
    %4 = vector.broadcast %3 : vector<1x64xf32> to vector<16x64xf32>
    %5 = arith.addf %2, %4 : vector<16x64xf32>
    %cst_5 = arith.constant 5.000000e-01 : f32
    %6 = vector.broadcast %cst_5 : f32 to vector<16x64xf32>
    %7 = arith.mulf %6, %5 : vector<16x64xf32>
    %cst_6 = arith.constant 0.707106769 : f32
    %8 = vector.broadcast %cst_6 : f32 to vector<16x64xf32>
    %9 = arith.mulf %5, %8 : vector<16x64xf32>
    %10 = math.erf %9 : vector<16x64xf32>
    %cst_7 = arith.constant 1.000000e+00 : f32
    %11 = vector.broadcast %cst_7 : f32 to vector<16x64xf32>
    %12 = arith.addf %11, %10 : vector<16x64xf32>
    %13 = arith.mulf %7, %12 : vector<16x64xf32>
    %c0_8 = arith.constant 0 : index
    %c0_9 = arith.constant 0 : index
    %14 = vector.load %arg4[%c0_8, %c0_9] : memref<64x32xf32, #tpu.memory_space<vmem>>, vector<64x32xf32>
    %cst_10 = arith.constant dense<0.000000e+00> : vector<16x32xf32>
    %15 = tpu.matmul %13, %14, %cst_10 {dimension_numbers = #tpu.dot_dimension_numbers<[1], [0], [0], [1], [0, 0, 1, 1], [], []>} : vector<16x64xf32>, vector<64x32xf32>, vector<16x32xf32> -> vector<16x32xf32>
    %c0_11 = arith.constant 0 : index
    %c0_12 = arith.constant 0 : index
    %16 = vector.load %arg5[%c0_11, %c0_12] : memref<1x32xf32, #tpu.memory_space<vmem>>, vector<1x32xf32>
    %17 = vector.broadcast %16 : vector<1x32xf32> to vector<16x32xf32>
    %18 = arith.addf %15, %17 : vector<16x32xf32>
    %c0_13 = arith.constant 0 : index
    %c0_14 = arith.constant 0 : index
    %19 = vector.load %arg6[%c0_13, %c0_14] : memref<16x32xf32, #tpu.memory_space<vmem>>, vector<16x32xf32>
    tpu.vector_store %arg6[%c0_13, %c0_14], %18 {strides = array<i32>} : memref<16x32xf32, #tpu.memory_space<vmem>>, vector<16x32xf32>,
    return
  }
  func.func @transform_0(%arg0: i32) -> (i32, i32) {
    %c0_i32 = arith.constant 0 : i32
    %c0_i32_0 = arith.constant 0 : i32
    return %arg0, %c0_i32 : i32, i32
  }
  func.func @transform_1(%arg0: i32) -> (i32, i32) {
    %c0_i32 = arith.constant 0 : i32
    %c0_i32_0 = arith.constant 0 : i32
    %c0_i32_1 = arith.constant 0 : i32
    return %c0_i32, %c0_i32_0 : i32, i32
  }
  func.func @transform_2(%arg0: i32) -> (i32, i32) {
    %c0_i32 = arith.constant 0 : i32
    %c0_i32_0 = arith.constant 0 : i32
    %c0_i32_1 = arith.constant 0 : i32
    return %c0_i32, %c0_i32_0 : i32, i32
  }
  func.func @transform_3(%arg0: i32) -> (i32, i32) {
    %c0_i32 = arith.constant 0 : i32
    %c0_i32_0 = arith.constant 0 : i32
    %c0_i32_1 = arith.constant 0 : i32
    return %c0_i32, %c0_i32_0 : i32, i32
  }
  func.func @transform_4(%arg0: i32) -> (i32, i32) {
    %c0_i32 = arith.constant 0 : i32
    %c0_i32_0 = arith.constant 0 : i32
    %c0_i32_1 = arith.constant 0 : i32
    return %c0_i32, %c0_i32_0 : i32, i32
  }
  func.func @transform_5(%arg0: i32) -> (i32, i32) {
    %c0_i32 = arith.constant 0 : i32
    %c0_i32_0 = arith.constant 0 : i32
    return %arg0, %c0_i32 : i32, i32
  }
}

</mosaic_0001>

<bundles_post_ra>
// kernel: mlp_pallas.1
= control target key start
LH: loop header
LB: loop body
LE: loop exit
PB: predicated region body
PF: predicated region fallthrough
CT: control target
= control target key end

     0   :  { %10 = vsyncpa [#allocation3], 0  ;;  %s669_s0 = inlined_call_operand.hbm [shape: f32[16,32], index: 0, kind: input, shape index: {}]   ;;  %s670_s1 = inlined_call_operand.hbm [shape: f32[32,64], index: 1, kind: input, shape index: {}]   ;;  %s671_s2 = inlined_call_operand.hbm [shape: f32[1,64], index: 2, kind: input, shape index: {}]   ;;  %s672_s3 = inlined_call_operand.hbm [shape: f32[64,32], index: 3, kind: input, shape index: {}]   ;;  %s673_s4 = inlined_call_operand.hbm [shape: f32[1,32], index: 4, kind: input, shape index: {}]   ;;  %s674_s5 = inlined_call_operand.hbm [shape: f32[16,32], index: 5, kind: output, shape index: {}]  }
   0x1   :  { %11 = vsyncpa [#allocation6], 0 }
   0x2   :  { %12 = vsyncpa [#allocation9], 0 }
   0x3   :  { %13 = vsyncpa [#allocation4], 0  ;;  %s536_s18 = smov [#allocation5]   ;;  %s537_s20 = smov [#allocation8]  }
   0x4   :  { %s31_s19 = sshll.u32 %s536_s18, 4  ;;  %s53_s21 = sshll.u32 %s537_s20, 4  ;;  %s32_s19 = int_to_ptr.vmem [resolvable:$true] %s31_s19  ;;  %s574_s21 = int_to_ptr.vmem [resolvable:$true] %s53_s21 }
   0x5   :  { %s396_s24 = scalar_lea.hbm %s670_s1, 512 }
   0x6   :  { %p397_p0 = scmp.ne.s32.totalorder %s670_s1, %s396_s24  ;;  %p400_p1 = scmp.lt.u32.totalorder %s396_s24, %s670_s1 }
   0x8   :  { %p402_p2 = pnand %p400_p1, %p397_p0 }
   0xa   :  { %405 = shalt.err (!%p402_p2)
}
   0xb   :  { %s406_s29 = scalar_lea.vmem %s32_s19, 512  ;;  %p411_p4 = scmp.lt.s32.totalorder %s32_s19, %s32_s19 }
   0xc   :  { %p407_p3 = scmp.ne.s32.totalorder %s32_s19, %s406_s29  ;;  %p412_p5 = scmp.lt.s32.totalorder %s406_s29, %s406_s29 }
   0xe   :  { %p413_p6 = por %p412_p5, %p411_p4 }
  0x10   :  { %p414_p7 = pnand %p413_p6, %p407_p3 }
  0x12   :  { %417 = shalt.err (!%p414_p7)
}
  0x13   :  { %s538_s30 = smov 128   ;;  %s539_s6 = smov 8  }
  0x14   :  { %37 = dma.hbm_to_vmem [thread:$0]  %s670_s1, 512, %s32_s19, [#allocation6], %s538_s30, %s538_s30, %s539_s6  }
  0x15   :  { %s418_s11 = scalar_lea.hbm %s672_s3, 1024 }
  0x16   :  { %p419_p8 = scmp.ne.s32.totalorder %s672_s3, %s418_s11  ;;  %p422_p9 = scmp.lt.u32.totalorder %s418_s11, %s672_s3 }
  0x18   :  { %p424_p10 = pnand %p422_p9, %p419_p8 }
  0x1a   :  { %427 = shalt.err (!%p424_p10)
}
  0x1b   :  { %s428_s16 = scalar_lea.vmem %s574_s21, 1024  ;;  %p433_p12 = scmp.lt.s32.totalorder %s574_s21, %s574_s21 }
  0x1c   :  { %p429_p11 = scmp.ne.s32.totalorder %s574_s21, %s428_s16  ;;  %p434_p13 = scmp.lt.s32.totalorder %s428_s16, %s428_s16 }
  0x1e   :  { %p435_p0 = por %p434_p13, %p433_p12 }
  0x20   :  { %p436_p1 = pnand %p435_p0, %p429_p11 }
  0x22   :  { %439 = shalt.err (!%p436_p1)
}
  0x23   :  { %59 = dma.hbm_to_vmem [thread:$0]  %s672_s3, 1024, %s574_s21, [#allocation9], %s538_s30, %s538_s30, %s539_s6  }
  0x24   :  { %s540_s18 = smov [#allocation2]   ;;  %s541_s20 = smov [#allocation7]  }
  0x25   :  { %s19_s19 = sshll.u32 %s540_s18, 4  ;;  %s44_s22 = sshll.u32 %s541_s20, 4  ;;  %s20_s19 = int_to_ptr.vmem [resolvable:$true] %s19_s19  ;;  %s45_s22 = int_to_ptr.vmem [resolvable:$true] %s44_s22 }
  0x26   :  { %s440_s25 = scalar_lea.hbm %s669_s0, 256 }
  0x27   :  { %p441_p2 = scmp.ne.s32.totalorder %s669_s0, %s440_s25  ;;  %p444_p3 = scmp.lt.u32.totalorder %s440_s25, %s669_s0 }
  0x29   :  { %p446_p4 = pnand %p444_p3, %p441_p2 }
  0x2b   :  { %449 = shalt.err (!%p446_p4)
}
  0x2c   :  { %s450_s3 = scalar_lea.vmem %s20_s19, 256  ;;  %p455_p6 = scmp.lt.s32.totalorder %s20_s19, %s20_s19 }
  0x2d   :  { %p451_p5 = scmp.ne.s32.totalorder %s20_s19, %s450_s3  ;;  %p456_p7 = scmp.lt.s32.totalorder %s450_s3, %s450_s3 }
  0x2f   :  { %p457_p8 = por %p456_p7, %p455_p6 }
  0x31   :  { %p458_p9 = pnand %p457_p8, %p451_p5 }
  0x33   :  { %461 = shalt.err (!%p458_p9)
}
  0x34   :  { %25 = dma.hbm_to_vmem [thread:$0]  %s669_s0, 256, %s20_s19, [#allocation3], %s538_s30, %s538_s30, %s539_s6  }
  0x35   :  { %s462_s10 = scalar_lea.hbm %s671_s2, 16 }
  0x36   :  { %p463_p10 = scmp.ne.s32.totalorder %s671_s2, %s462_s10  ;;  %p466_p11 = scmp.lt.u32.totalorder %s462_s10, %s671_s2 }
  0x38   :  { %p468_p12 = pnand %p466_p11, %p463_p10 }
  0x3a   :  { %471 = shalt.err (!%p468_p12)
}
  0x3b   :  { %s472_s15 = scalar_lea.vmem %s45_s22, 16  ;;  %s476_s16 = scalar_lea.vmem %s45_s22, 32 }
  0x3c   :  { %p473_p13 = scmp.ne.s32.totalorder %s45_s22, %s472_s15  ;;  %p477_p0 = scmp.lt.s32.totalorder %s45_s22, %s45_s22 }
  0x3d   :  { %p478_p1 = scmp.lt.s32.totalorder %s476_s16, %s472_s15 }
  0x3f   :  { %p479_p2 = por %p478_p1, %p477_p0 }
  0x41   :  { %p480_p3 = pnand %p479_p2, %p473_p13 }
  0x43   :  { %483 = shalt.err (!%p480_p3)
}
  0x44   :  { %47 = dma.hbm_to_vmem [thread:$0]  %s671_s2, 16, %s45_s22, [#allocation6]  }
  0x45   :  { %s542_s17 = smov [#allocation10]   ;;  %s484_s23 = scalar_lea.hbm %s673_s4, 16 }
  0x46   :  { %s66_s18 = sshll.u32 %s542_s17, 4  ;;  %p485_p4 = scmp.ne.s32.totalorder %s673_s4, %s484_s23  ;;  %s67_s18 = int_to_ptr.vmem [resolvable:$true] %s66_s18 }
  0x47   :  { %p488_p5 = scmp.lt.u32.totalorder %s484_s23, %s673_s4 }
  0x49   :  { %p490_p6 = pnand %p488_p5, %p485_p4 }
  0x4b   :  { %493 = shalt.err (!%p490_p6)
}
  0x4c   :  { %s494_s28 = scalar_lea.vmem %s67_s18, 16  ;;  %s498_s2 = scalar_lea.vmem %s67_s18, 32 }
  0x4d   :  { %p495_p7 = scmp.ne.s32.totalorder %s67_s18, %s494_s28  ;;  %p499_p8 = scmp.lt.s32.totalorder %s67_s18, %s67_s18 }
  0x4e   :  { %p500_p9 = scmp.lt.s32.totalorder %s498_s2, %s494_s28 }
  0x50   :  { %p501_p10 = por %p500_p9, %p499_p8 }
  0x52   :  { %p502_p11 = pnand %p501_p10, %p495_p7 }
  0x54   :  { %505 = shalt.err (!%p502_p11)
}
  0x55   :  { %69 = dma.hbm_to_vmem [thread:$0]  %s673_s4, 16, %s67_s18, [#allocation9]  }
  0x56   :  { %528 = dma.done.wait [#allocation3], 256  }
  0x57   :  { %529 = vsyncadd [#allocation3], 4294967040 }
  0x58   :  { %530 = dma.done.wait [#allocation6], 528  }
  0x59   :  { %531 = vsyncadd [#allocation6], 4294966768 }
  0x5a   :  { %532 = dma.done.wait [#allocation9], 1040  }
  0x5b   :  { %533 = vsyncadd [#allocation9], 4294966256  ;;  %vm98_vm0 = vcmask 261120   ;;  %v87_v0 = vld [vmem:[#allocation5] sm:$0xff]  ;;  %v88_v1 = vld [vmem:[#allocation5 + $0x8] sm:$0xff]  ;;  %vm205_vm1 = vcmask 523264  }
  0x5c   :  { %v89_v2 = vld [vmem:[#allocation5 + $0x10] sm:$0xff]  ;;  %v360_v3 = vpack.c.bf16 %v88_v1, %v87_v0  ;;  %v90_v4 = vld [vmem:[#allocation5 + $0x18] sm:$0xff]  ;;  %v190_v8 = vld [vmem:[#allocation8] sm:$0xff]  ;;  %s543_s4 = smov [#allocation11]  }
  0x5d   :  { %v85_v5 = vld [vmem:[#allocation2] sm:$0xff]  ;;  %v364_v6 = vpack.c.bf16 %v90_v4, %v89_v2  ;;  %v86_v7 = vld [vmem:[#allocation2 + $0x8] sm:$0xff]  ;;  %v194_v14 = vld [vmem:[#allocation8 + $0x20] sm:$0xff]  ;;  %s294_s3 = sshll.u32 %s543_s4, 4  ;;  %s295_s3 = int_to_ptr.vmem [resolvable:$true] %s294_s3 }
  0x5e   :  { %338 = vmatprep.mubr.msk.f32.mxu0 %vm98_vm0, %v85_v5  ;;  %361 = vmatprep.subr.bf16.mxu0 %v360_v3  ;;  %v191_v9 = vld [vmem:[#allocation8 + $0x8] sm:$0xff]  ;;  %v192_v11 = vld [vmem:[#allocation8 + $0x10] sm:$0xff]  ;;  %v193_v12 = vld [vmem:[#allocation8 + $0x18] sm:$0xff]  ;;  %s506_s21 = scalar_lea.vmem %s295_s3, 256  ;;  %p511_p13 = scmp.lt.s32.totalorder %s295_s3, %s295_s3 }
  0x5f   :  { %363 = vmatpush3.bf16.msra.mxu0 %v360_v3  ;;  %v368_v10 = vpack.c.bf16 %v191_v9, %v190_v8  ;;  %v372_v13 = vpack.c.bf16 %v193_v12, %v192_v11  ;;  %v195_v15 = vld [vmem:[#allocation8 + $0x28] sm:$0xff]  ;;  %v196_v17 = vld [vmem:[#allocation8 + $0x30] sm:$0xff]  ;;  %v197_v18 = vld [vmem:[#allocation8 + $0x38] sm:$0xff]  ;;  %p507_p12 = scmp.ne.s32.totalorder %s295_s3, %s506_s21  ;;  %p512_p0 = scmp.lt.s32.totalorder %s506_s21, %s506_s21 }
  0x60   :  { %365 = vmatprep.subr.bf16.mxu0 %v364_v6  ;;  %v376_v16 = vpack.c.bf16 %v195_v15, %v194_v14  ;;  %v380_v19 = vpack.c.bf16 %v197_v18, %v196_v17  ;;  %v308_v20 = vld [vmem:[#allocation7] ss:$0 sm:$0xff]  ;;  %v311_v35 = vld [vmem:[#allocation10] ss:$0 sm:$0xff] }
  0x61   :  { %369 = vmatprep.subr.bf16.mxu1 %v368_v10  ;;  %p513_p1 = por %p512_p0, %p511_p13 }
  0x62   :  { %371 = vmatpush3.bf16.msra.mxu1 %v368_v10 }
  0x63   :  { %367 = vmatpush3.bf16.msra.mxu0 %v364_v6  ;;  %373 = vmatprep.subr.bf16.mxu1 %v372_v13  ;;  %p514_p2 = pnand %p513_p1, %p507_p12 }
  0x66   :  { %339 = vmatmul.mubr.msk.f32.vlgmr.msra.gmra.mrb[0].mxu0 %vm98_vm0, %v86_v7  ;;  %375 = vmatpush3.bf16.msra.mxu1 %v372_v13 }
  0x67   :  { %377 = vmatprep.subr.bf16.mxu1 %v376_v16 }
  0x6a   :  { %379 = vmatpush3.bf16.msra.mxu1 %v376_v16 }
  0x6b   :  { %381 = vmatprep.subr.bf16.mxu1 %v380_v19 }
  0x6e   :  { %383 = vmatpush3.bf16.msra.mxu1 %v380_v19 }
 0x139   :  { %v340_v21 = vpop.f32.mrb[0].mxu0 }
 0x13a   :  { %v177_v22 = vadd.f32 %v340_v21, %v308_v20  ;;  %v171_v23 = vpop.f32.mrb[1].mxu0 }
 0x13b   :  { %v172_v24 = vadd.f32 %v308_v20, %v171_v23 }
 0x13c   :  { %v183_v25 = vmul.f32 0.70710677, %v177_v22  ;;  %v181_v32 = vmul.f32 0.5, %v177_v22 }
 0x13d   :  { %v182_v26 = vmul.f32 0.70710677, %v172_v24  ;;  %v180_v30 = vmul.f32 0.5, %v172_v24 }
 0x13e   :  { %392 = verf.f32 %v183_v25 }
 0x13f   :  { %394 = verf.f32 %v182_v26 }
 0x148   :  { %v393_v27 = vpop.eup %392 }
 0x149   :  { %v395_v28 = vpop.eup %394  ;;  %v187_v29 = vadd.f32 1.0, %v393_v27 }
 0x14a   :  { %v186_v31 = vadd.f32 1.0, %v395_v28 }
 0x14b   :  { %v189_v34 = vmul.f32 %v187_v29, %v181_v32 }
 0x14c   :  { %v188_v33 = vmul.f32 %v186_v31, %v180_v30 }
 0x14e   :  { %357 = vmatprep.mubr.msk.f32.mxu1 %vm205_vm1, %v188_v33 }
 0x14f   :  { %358 = vmatmul.mubr.msk.f32.vlgmr.msra.gmra.mrb[0].mxu1 %vm205_vm1, %v189_v34 }
 0x222   :  { %v359_v36 = vpop.f32.mrb[0].mxu1 }
 0x223   :  { %v284_v37 = vadd.f32 %v359_v36, %v311_v35  ;;  %v278_v38 = vpop.f32.mrb[1].mxu1 }
 0x224   :  { %v279_v39 = vadd.f32 %v311_v35, %v278_v38 }
 0x225   :  { %288 = vst.msk [vmem:[#allocation11 + $0x8] sm:$0xff] %vm98_vm0, %v284_v37 }
 0x226   :  { %287 = vst.msk [vmem:[#allocation11] sm:$0xff] %vm98_vm0, %v279_v39 }
 0x227   :  { %517 = shalt.err (!%p514_p2)
}
 0x228   :  { %s518_s9 = scalar_lea.hbm %s674_s5, 256 }
 0x229   :  { %p519_p3 = scmp.ne.s32.totalorder %s674_s5, %s518_s9  ;;  %p522_p4 = scmp.lt.u32.totalorder %s518_s9, %s674_s5 }
 0x22b   :  { %p524_p5 = pnand %p522_p4, %p519_p3 }
 0x22d   :  { %527 = shalt.err (!%p524_p5)
}
 0x22e   :  { %300 = dma.vmem_to_hbm [thread:$0]  %s295_s3, 256, %s674_s5, [#allocation4], %s538_s30, %s538_s30, %s539_s6  }
 0x22f   :  { %534 = dma.done.wait [#allocation4], 256  }
 0x230   :  { %535 = vsyncadd [#allocation4], 4294967040 }
 0x231   :  { %304 = vsyncpa [#allocation3], 1 }
 0x232   :  { %305 = vsyncpa [#allocation6], 1 }
 0x233   :  { %306 = vsyncpa [#allocation9], 1 }
 0x234   :  { %307 = vsyncpa [#allocation4], 1 }

</bundles_post_ra>
